<compile_context>
chip_gen: v6e
topology: v6e:2x2x1
jax: 0.10.0
libtpu: 0.0.40
codegen_flags: <defaults>
</compile_context>

<pallas_src>
import functools

import jax
import jax.numpy as jnp
from jax.experimental import pallas as pl
from jax.experimental.pallas import tpu as pltpu

_LANES = 128
_SUBLANES = 8


def _round_up(x, m):
    return ((x + m - 1) // m) * m


def _cdiv(a, b):
    return (a + b - 1) // b


def _tc_count():
    # v7x has 2 TensorCores per chip; v5e/v6e have 1.  Query defensively so a
    # missing attribute (or interpreter backend) just falls back to 1.
    try:
        return max(1, int(getattr(jax.devices()[0], "num_cores", 1)))
    except Exception:
        return 1


def _choose_grid(batch, tb_max=2048):
    """Pick (TB, steps, B_pad).  TB is a multiple of 128 lanes; steps is rounded
    up to a multiple of the TensorCore count when there is >1 lane-tile of work
    so v7x's two cores split the batch evenly."""
    b_min = _round_up(max(batch, 1), _LANES)
    steps = _cdiv(b_min, tb_max)
    cores = _tc_count()
    if cores > 1 and b_min > _LANES:
        steps = _round_up(steps, cores)
    tb = _round_up(_cdiv(b_min, steps), _LANES)
    return tb, steps, tb * steps


def _net_kernel(hidden, x_ref, w1_ref, b1_ref, w2_ref, b2_ref, o_ref):
    """One batch tile, feature-in-sublane / batch-in-lane.

    x_ref : (in_feature, TB)   f32   batch in lanes
    w1_ref: (HSUB, in_feature) f32   fc1.weight (PyTorch layout), sublane-padded
    b1_ref: (HSUB, 1)          f32
    w2_ref: (OSUB, HSUB)       f32   fc2.weight (PyTorch layout), sublane-padded
    b2_ref: (OSUB, 1)          f32
    o_ref : (OSUB, TB)         f32
    """
    in_feature = x_ref.shape[0]

    # ---- fc1: K = in_feature (=2) -> unrolled VPU FMA chain, bias folded into
    # the tanh argument (no explicit broadcast_to accumulator init). ----
    acc = x_ref[0:1, :] * w1_ref[:, 0:1]            # (1,TB)*(HSUB,1) -> (HSUB,TB)
    for k in range(1, in_feature):                  # static, unrolled at trace
        acc = acc + x_ref[k:k + 1, :] * w1_ref[:, k:k + 1]
    h = jnp.tanh(acc + b1_ref[...])                 # (HSUB, TB), EUP

    # ---- fc2: contraction over the *real* hidden rows only (10 of HSUB=16),
    # again a short VPU FMA chain -> no MXU push/pop, no tanh on dead lanes. ----
    acc2 = h[0:1, :] * w2_ref[:, 0:1]               # (1,TB)*(OSUB,1) -> (OSUB,TB)
    for j in range(1, hidden):
        acc2 = acc2 + h[j:j + 1, :] * w2_ref[:, j:j + 1]
    o_ref[...] = jnp.tanh(acc2 + b2_ref[...]).astype(o_ref.dtype)


def prepare_params(w1, b1, w2, b2):
    """Pad + lay out the (tiny, never-changing) parameters ONCE at init time.

    Inputs use the PyTorch nn.Linear convention:
      w1: (hidden, in_feature)   fc1.weight      b1: (hidden,)   fc1.bias
      w2: (out_feature, hidden)  fc2.weight      b2: (out_feature,) fc2.bias
    Zero padding is exact: tanh(0)=0 and zero rows/columns contribute nothing.
    """
    w1 = jnp.asarray(w1, jnp.float32)
    w2 = jnp.asarray(w2, jnp.float32)
    b1 = jnp.asarray(b1, jnp.float32).reshape(-1, 1)
    b2 = jnp.asarray(b2, jnp.float32).reshape(-1, 1)

    hidden, in_feature = w1.shape
    out_feature = w2.shape[0]
    hsub = _round_up(hidden, _SUBLANES)
    osub = _round_up(out_feature, _SUBLANES)

    return dict(
        w1=jnp.pad(w1, ((0, hsub - hidden), (0, 0))),
        b1=jnp.pad(b1, ((0, hsub - hidden), (0, 0))),
        w2=jnp.pad(w2, ((0, osub - out_feature), (0, hsub - hidden))),
        b2=jnp.pad(b2, ((0, osub - out_feature), (0, 0))),
        in_feature=int(in_feature), hidden=int(hidden),
        out_feature=int(out_feature), hsub=int(hsub), osub=int(osub),
    )


def net_forward(params, x, *, return_padded=False):
    """Forward pass of Net.

    x: (B, in_feature) float32.
    Returns (B, out_feature) float32, or - with return_padded=True - the raw
    padded (OSUB, B_pad) batch-in-lane block (real data at [:out_feature, :B]),
    which avoids the post-kernel slice/transpose copy entirely.
    """
    x = jnp.asarray(x, jnp.float32)
    B, in_feature = x.shape
    assert in_feature == params["in_feature"]
    hsub, osub = params["hsub"], params["osub"]

    tb, steps, b_pad = _choose_grid(B)

    # Feature-in-sublane / batch-in-lane.  (A rollout buffer that already stores
    # observations feature-major would skip this transpose as well.)
    x_t = x.T
    if b_pad != B:
        x_t = jnp.pad(x_t, ((0, 0), (0, b_pad - B)))

    kernel = functools.partial(_net_kernel, params["hidden"])
    out_t = pl.pallas_call(
        kernel,
        out_shape=jax.ShapeDtypeStruct((osub, b_pad), jnp.float32),
        grid=(steps,),
        in_specs=[
            pl.BlockSpec((in_feature, tb), lambda i: (0, i)),    # x: batch-tiled
            pl.BlockSpec((hsub, in_feature), lambda i: (0, 0)),  # w1: resident
            pl.BlockSpec((hsub, 1), lambda i: (0, 0)),           # b1: resident
            pl.BlockSpec((osub, hsub), lambda i: (0, 0)),        # w2: resident
            pl.BlockSpec((osub, 1), lambda i: (0, 0)),           # b2: resident
        ],
        out_specs=pl.BlockSpec((osub, tb), lambda i: (0, i)),    # lane-dense out
        compiler_params=pltpu.CompilerParams(
            dimension_semantics=("parallel",)),
    )(x_t, params["w1"], params["b1"], params["w2"], params["b2"])

    if return_padded:
        return out_t
    # API-parity slice/transpose only; downstream consumers should prefer
    # return_padded=True and index lazily.
    return out_t[:params["out_feature"], :B].T


def _reference(x, w1, b1, w2, b2):
    # PyTorch-convention weights: y = tanh(tanh(x @ W1^T + b1) @ W2^T + b2)
    h = jnp.tanh(x @ w1.T + b1.reshape(1, -1))
    return jnp.tanh(h @ w2.T + b2.reshape(1, -1))


if __name__ == "__main__":
    # MountainCar: state dim 2, 3 actions; hidden=10 per the module.
    in_feature, hidden, out_feature = 2, 10, 3

    key = jax.random.PRNGKey(0)
    k1, k2, k3, k4, kx, kx2 = jax.random.split(key, 6)

    # Deterministic init mimicking nn.Linear uniform(-1/sqrt(fan_in), 1/sqrt(fan_in))
    bound1 = 1.0 / jnp.sqrt(in_feature)
    w1 = jax.random.uniform(k1, (hidden, in_feature), jnp.float32, -bound1, bound1)
    b1 = jax.random.uniform(k2, (hidden,), jnp.float32, -bound1, bound1)
    bound2 = 1.0 / jnp.sqrt(hidden)
    w2 = jax.random.uniform(k3, (out_feature, hidden), jnp.float32, -bound2, bound2)
    b2 = jax.random.uniform(k4, (out_feature,), jnp.float32, -bound2, bound2)

    # Pad / lay out parameters ONCE (model-init time), not per forward call.
    params = prepare_params(w1, b1, w2, b2)

    # Small single-tile case (batch = 8).
    x_small = jax.random.normal(kx, (8, in_feature), dtype=jnp.float32)
    out_small = net_forward(params, x_small)
    jax.block_until_ready(out_small)
    ref_small = _reference(x_small, w1, b1, w2, b2)
    assert out_small.shape == (8, out_feature)
    assert jnp.allclose(out_small, ref_small, atol=1e-5), "small-batch mismatch"

    # Batched rollout case exercising the batch grid (multiple lane tiles +
    # partial-tile padding + even step split when 2 TensorCores are present).
    x_big = jax.random.normal(kx2, (1029, in_feature), dtype=jnp.float32)
    out_big = net_forward(params, x_big)
    jax.block_until_ready(out_big)
    ref_big = _reference(x_big, w1, b1, w2, b2)
    assert out_big.shape == (1029, out_feature)
    assert jnp.allclose(out_big, ref_big, atol=1e-5), "batched mismatch"

    # Padded-block path (no post-kernel slice copy) also works.
    out_pad = net_forward(params, x_big, return_padded=True)
    jax.block_until_ready(out_pad)
    assert jnp.allclose(out_pad[:out_feature, :1029].T, ref_big, atol=1e-5)

    # TODO(synk): dropout layers are defined in __init__ but never used in
    # forward(), so no PRNG-masked path is required for forward parity.
    print("KERNEL_OK")
</pallas_src>

<mosaic_0001>
module attributes {stable_mosaic.version = 11 : i64} {
  func.func @_net_kernel(%arg0: i32, %arg1: memref<2x128xf32, #tpu.memory_space<vmem>>, %arg2: memref<16x2xf32, #tpu.memory_space<vmem>>, %arg3: memref<16x1xf32, #tpu.memory_space<vmem>>, %arg4: memref<8x16xf32, #tpu.memory_space<vmem>>, %arg5: memref<8x1xf32, #tpu.memory_space<vmem>>, %arg6: memref<8x128xf32, #tpu.memory_space<vmem>>) attributes {dimension_semantics = [#tpu.dimension_semantics<parallel>], iteration_bounds = array<i64: 1>, scalar_prefetch = 0 : i64, scratch_operands = 0 : i64, tpu.core_type = #tpu.core_type<tc>, window_params = [{transform_indices = @transform_0, window_bounds = array<i64: 2, 128>}, {pipeline_mode = #tpu.pipeline_mode<synchronous>, transform_indices = @transform_1, window_bounds = array<i64: 16, 2>}, {pipeline_mode = #tpu.pipeline_mode<synchronous>, transform_indices = @transform_2, window_bounds = array<i64: 16, 1>}, {pipeline_mode = #tpu.pipeline_mode<synchronous>, transform_indices = @transform_3, window_bounds = array<i64: 8, 16>}, {pipeline_mode = #tpu.pipeline_mode<synchronous>, transform_indices = @transform_4, window_bounds = array<i64: 8, 1>}, {transform_indices = @transform_5, window_bounds = array<i64: 8, 128>}]} {
    %c0 = arith.constant 0 : index
    %c0_0 = arith.constant 0 : index
    %0 = vector.load %arg1[%c0, %c0_0] : memref<2x128xf32, #tpu.memory_space<vmem>>, vector<1x128xf32>
    %c0_1 = arith.constant 0 : index
    %c0_2 = arith.constant 0 : index
    %1 = vector.load %arg2[%c0_1, %c0_2] : memref<16x2xf32, #tpu.memory_space<vmem>>, vector<16x1xf32>
    %2 = vector.broadcast %0 : vector<1x128xf32> to vector<16x128xf32>
    %3 = vector.broadcast %1 : vector<16x1xf32> to vector<16x128xf32>
    %4 = arith.mulf %2, %3 : vector<16x128xf32>
    %c1 = arith.constant 1 : index
    %c0_3 = arith.constant 0 : index
    %5 = vector.load %arg1[%c1, %c0_3] : memref<2x128xf32, #tpu.memory_space<vmem>>, vector<1x128xf32>
    %c0_4 = arith.constant 0 : index
    %c1_5 = arith.constant 1 : index
    %6 = vector.load %arg2[%c0_4, %c1_5] : memref<16x2xf32, #tpu.memory_space<vmem>>, vector<16x1xf32>
    %7 = vector.broadcast %5 : vector<1x128xf32> to vector<16x128xf32>
    %8 = vector.broadcast %6 : vector<16x1xf32> to vector<16x128xf32>
    %9 = arith.mulf %7, %8 : vector<16x128xf32>
    %10 = arith.addf %4, %9 : vector<16x128xf32>
    %c0_6 = arith.constant 0 : index
    %c0_7 = arith.constant 0 : index
    %11 = vector.load %arg3[%c0_6, %c0_7] : memref<16x1xf32, #tpu.memory_space<vmem>>, vector<16x1xf32>
    %12 = vector.broadcast %11 : vector<16x1xf32> to vector<16x128xf32>
    %13 = arith.addf %10, %12 : vector<16x128xf32>
    %14 = math.tanh %13 : vector<16x128xf32>
    %15 = vector.extract_strided_slice %14 {offsets = [0, 0], sizes = [1, 128], strides = [1, 1]} : vector<16x128xf32> to vector<1x128xf32>
    %c0_8 = arith.constant 0 : index
    %c0_9 = arith.constant 0 : index
    %16 = vector.load %arg4[%c0_8, %c0_9] : memref<8x16xf32, #tpu.memory_space<vmem>>, vector<8x1xf32>
    %17 = vector.broadcast %15 : vector<1x128xf32> to vector<8x128xf32>
    %18 = vector.broadcast %16 : vector<8x1xf32> to vector<8x128xf32>
    %19 = arith.mulf %17, %18 : vector<8x128xf32>
    %20 = vector.extract_strided_slice %14 {offsets = [1, 0], sizes = [1, 128], strides = [1, 1]} : vector<16x128xf32> to vector<1x128xf32>
    %c0_10 = arith.constant 0 : index
    %c1_11 = arith.constant 1 : index
    %21 = vector.load %arg4[%c0_10, %c1_11] : memref<8x16xf32, #tpu.memory_space<vmem>>, vector<8x1xf32>
    %22 = vector.broadcast %20 : vector<1x128xf32> to vector<8x128xf32>
    %23 = vector.broadcast %21 : vector<8x1xf32> to vector<8x128xf32>
    %24 = arith.mulf %22, %23 : vector<8x128xf32>
    %25 = arith.addf %19, %24 : vector<8x128xf32>
    %26 = vector.extract_strided_slice %14 {offsets = [2, 0], sizes = [1, 128], strides = [1, 1]} : vector<16x128xf32> to vector<1x128xf32>
    %c0_12 = arith.constant 0 : index
    %c2 = arith.constant 2 : index
    %27 = vector.load %arg4[%c0_12, %c2] : memref<8x16xf32, #tpu.memory_space<vmem>>, vector<8x1xf32>
    %28 = vector.broadcast %26 : vector<1x128xf32> to vector<8x128xf32>
    %29 = vector.broadcast %27 : vector<8x1xf32> to vector<8x128xf32>
    %30 = arith.mulf %28, %29 : vector<8x128xf32>
    %31 = arith.addf %25, %30 : vector<8x128xf32>
    %32 = vector.extract_strided_slice %14 {offsets = [3, 0], sizes = [1, 128], strides = [1, 1]} : vector<16x128xf32> to vector<1x128xf32>
    %c0_13 = arith.constant 0 : index
    %c3 = arith.constant 3 : index
    %33 = vector.load %arg4[%c0_13, %c3] : memref<8x16xf32, #tpu.memory_space<vmem>>, vector<8x1xf32>
    %34 = vector.broadcast %32 : vector<1x128xf32> to vector<8x128xf32>
    %35 = vector.broadcast %33 : vector<8x1xf32> to vector<8x128xf32>
    %36 = arith.mulf %34, %35 : vector<8x128xf32>
    %37 = arith.addf %31, %36 : vector<8x128xf32>
    %38 = vector.extract_strided_slice %14 {offsets = [4, 0], sizes = [1, 128], strides = [1, 1]} : vector<16x128xf32> to vector<1x128xf32>
    %c0_14 = arith.constant 0 : index
    %c4 = arith.constant 4 : index
    %39 = vector.load %arg4[%c0_14, %c4] : memref<8x16xf32, #tpu.memory_space<vmem>>, vector<8x1xf32>
    %40 = vector.broadcast %38 : vector<1x128xf32> to vector<8x128xf32>
    %41 = vector.broadcast %39 : vector<8x1xf32> to vector<8x128xf32>
    %42 = arith.mulf %40, %41 : vector<8x128xf32>
    %43 = arith.addf %37, %42 : vector<8x128xf32>
    %44 = vector.extract_strided_slice %14 {offsets = [5, 0], sizes = [1, 128], strides = [1, 1]} : vector<16x128xf32> to vector<1x128xf32>
    %c0_15 = arith.constant 0 : index
    %c5 = arith.constant 5 : index
    %45 = vector.load %arg4[%c0_15, %c5] : memref<8x16xf32, #tpu.memory_space<vmem>>, vector<8x1xf32>
    %46 = vector.broadcast %44 : vector<1x128xf32> to vector<8x128xf32>
    %47 = vector.broadcast %45 : vector<8x1xf32> to vector<8x128xf32>
    %48 = arith.mulf %46, %47 : vector<8x128xf32>
    %49 = arith.addf %43, %48 : vector<8x128xf32>
    %50 = vector.extract_strided_slice %14 {offsets = [6, 0], sizes = [1, 128], strides = [1, 1]} : vector<16x128xf32> to vector<1x128xf32>
    %c0_16 = arith.constant 0 : index
    %c6 = arith.constant 6 : index
    %51 = vector.load %arg4[%c0_16, %c6] : memref<8x16xf32, #tpu.memory_space<vmem>>, vector<8x1xf32>
    %52 = vector.broadcast %50 : vector<1x128xf32> to vector<8x128xf32>
    %53 = vector.broadcast %51 : vector<8x1xf32> to vector<8x128xf32>
    %54 = arith.mulf %52, %53 : vector<8x128xf32>
    %55 = arith.addf %49, %54 : vector<8x128xf32>
    %56 = vector.extract_strided_slice %14 {offsets = [7, 0], sizes = [1, 128], strides = [1, 1]} : vector<16x128xf32> to vector<1x128xf32>
    %c0_17 = arith.constant 0 : index
    %c7 = arith.constant 7 : index
    %57 = vector.load %arg4[%c0_17, %c7] : memref<8x16xf32, #tpu.memory_space<vmem>>, vector<8x1xf32>
    %58 = vector.broadcast %56 : vector<1x128xf32> to vector<8x128xf32>
    %59 = vector.broadcast %57 : vector<8x1xf32> to vector<8x128xf32>
    %60 = arith.mulf %58, %59 : vector<8x128xf32>
    %61 = arith.addf %55, %60 : vector<8x128xf32>
    %62 = vector.extract_strided_slice %14 {offsets = [8, 0], sizes = [1, 128], strides = [1, 1]} : vector<16x128xf32> to vector<1x128xf32>
    %c0_18 = arith.constant 0 : index
    %c8 = arith.constant 8 : index
    %63 = vector.load %arg4[%c0_18, %c8] : memref<8x16xf32, #tpu.memory_space<vmem>>, vector<8x1xf32>
    %64 = vector.broadcast %62 : vector<1x128xf32> to vector<8x128xf32>
    %65 = vector.broadcast %63 : vector<8x1xf32> to vector<8x128xf32>
    %66 = arith.mulf %64, %65 : vector<8x128xf32>
    %67 = arith.addf %61, %66 : vector<8x128xf32>
    %68 = vector.extract_strided_slice %14 {offsets = [9, 0], sizes = [1, 128], strides = [1, 1]} : vector<16x128xf32> to vector<1x128xf32>
    %c0_19 = arith.constant 0 : index
    %c9 = arith.constant 9 : index
    %69 = vector.load %arg4[%c0_19, %c9] : memref<8x16xf32, #tpu.memory_space<vmem>>, vector<8x1xf32>
    %70 = vector.broadcast %68 : vector<1x128xf32> to vector<8x128xf32>
    %71 = vector.broadcast %69 : vector<8x1xf32> to vector<8x128xf32>
    %72 = arith.mulf %70, %71 : vector<8x128xf32>
    %73 = arith.addf %67, %72 : vector<8x128xf32>
    %c0_20 = arith.constant 0 : index
    %c0_21 = arith.constant 0 : index
    %74 = vector.load %arg5[%c0_20, %c0_21] : memref<8x1xf32, #tpu.memory_space<vmem>>, vector<8x1xf32>
    %75 = vector.broadcast %74 : vector<8x1xf32> to vector<8x128xf32>
    %76 = arith.addf %73, %75 : vector<8x128xf32>
    %77 = math.tanh %76 : vector<8x128xf32>
    %c0_22 = arith.constant 0 : index
    %c0_23 = arith.constant 0 : index
    %78 = vector.load %arg6[%c0_22, %c0_23] : memref<8x128xf32, #tpu.memory_space<vmem>>, vector<8x128xf32>
    tpu.vector_store %arg6[%c0_22, %c0_23], %77 {strides = array<i32>} : memref<8x128xf32, #tpu.memory_space<vmem>>, vector<8x128xf32>,
    return
  }
  func.func @transform_0(%arg0: i32) -> (i32, i32) {
    %c0_i32 = arith.constant 0 : i32
    %c0_i32_0 = arith.constant 0 : i32
    return %c0_i32, %arg0 : i32, i32
  }
  func.func @transform_1(%arg0: i32) -> (i32, i32) {
    %c0_i32 = arith.constant 0 : i32
    %c0_i32_0 = arith.constant 0 : i32
    %c0_i32_1 = arith.constant 0 : i32
    return %c0_i32, %c0_i32_0 : i32, i32
  }
  func.func @transform_2(%arg0: i32) -> (i32, i32) {
    %c0_i32 = arith.constant 0 : i32
    %c0_i32_0 = arith.constant 0 : i32
    %c0_i32_1 = arith.constant 0 : i32
    return %c0_i32, %c0_i32_0 : i32, i32
  }
  func.func @transform_3(%arg0: i32) -> (i32, i32) {
    %c0_i32 = arith.constant 0 : i32
    %c0_i32_0 = arith.constant 0 : i32
    %c0_i32_1 = arith.constant 0 : i32
    return %c0_i32, %c0_i32_0 : i32, i32
  }
  func.func @transform_4(%arg0: i32) -> (i32, i32) {
    %c0_i32 = arith.constant 0 : i32
    %c0_i32_0 = arith.constant 0 : i32
    %c0_i32_1 = arith.constant 0 : i32
    return %c0_i32, %c0_i32_0 : i32, i32
  }
  func.func @transform_5(%arg0: i32) -> (i32, i32) {
    %c0_i32 = arith.constant 0 : i32
    %c0_i32_0 = arith.constant 0 : i32
    return %c0_i32, %arg0 : i32, i32
  }
}

</mosaic_0001>

<bundles_post_ra>
// kernel: tpu_custom_call.1
= control target key start
LH: loop header
LB: loop body
LE: loop exit
PB: predicated region body
PF: predicated region fallthrough
CT: control target
= control target key end

     0   :  { %v255_v2 = vmov 0   ;;  %s323_s0 = inlined_call_operand.vmem [shape: f32[2,128], index: 0, kind: input, shape index: {}]   ;;  %s324_s1 = inlined_call_operand.vmem [shape: f32[16,2], index: 1, kind: input, shape index: {}]   ;;  %s325_s2 = inlined_call_operand.vmem [shape: f32[16,1], index: 2, kind: input, shape index: {}]   ;;  %s326_s3 = inlined_call_operand.vmem [shape: f32[8,16], index: 3, kind: input, shape index: {}]   ;;  %s327_s4 = inlined_call_operand.vmem [shape: f32[8,1], index: 4, kind: input, shape index: {}]   ;;  %s328_s5 = inlined_call_operand.hbm [shape: f32[8,128], index: 5, kind: output, shape index: {}]  }
   0x1   :  { %v57_v0 = vld [vmem:[%s325_s2] sm:$0xff]  ;;  %212 = vset.pattern.permute.xlu1 %v255_v2  ;;  %210 = vset.pattern.permute.xlu0 %v255_v2  ;;  %v23_v3 = vld [vmem:[%s324_s1 + $0x8] sm:$0xff] }
   0x2   :  { %v22_v1 = vld [vmem:[%s324_s1] sm:$0xff]  ;;  %61 = vperm.xlu1 %212, %v57_v0  }
   0x3   :  { %30 = vperm.xlu0 %210, %v22_v1  }
   0x4   :  { %10 = vsyncpa [#allocation3], 0  ;;  %v256_v4 = vmov 1   ;;  %v58_v5 = vld [vmem:[%s325_s2 + $0x8] sm:$0xff]  ;;  %v73_v6 = vld [vmem:[%s326_s3] sm:$0xff]  ;;  %v257_v7 = vmov 2   ;;  %v74_v30 = vlaneseq }
   0x5   :  { %v258_v8 = vmov 5   ;;  %v259_v9 = vmov 3   ;;  %v260_v10 = vmov 8   ;;  %v261_v11 = vmov 4   ;;  %v174_v15 = vld [vmem:[%s327_s4] sm:$0xff] }
   0x6   :  { %35 = vperm.xlu1 %212, %v23_v3   ;;  %v262_v12 = vmov 6   ;;  %v263_v13 = vmov 7   ;;  %v264_v14 = vmov 9   ;;  %v197_v18 = vld [vmem:[%s323_s0] ss:$0 sm:$0xff]  ;;  %v75_v34 = vshrl.u32 %v74_v30, 7 }
   0x7   :  { %211 = vset.pattern.permute.xlu0 %v256_v4  ;;  %v198_v19 = vld [vmem:[%s323_s0 + $0x1] ss:$0 sm:$0xff]  ;;  %s265_s0 = smov [#allocation2]  }
   0x8   :  { %46 = vperm.xlu0 %211, %v22_v1   ;;  %v76_v36 = vsub.s32 0, %v75_v34  ;;  %v86_v37 = vsub.s32 1, %v75_v34  ;;  %v96_v38 = vsub.s32 2, %v75_v34  ;;  %v106_v39 = vsub.s32 3, %v75_v34  ;;  %s189_s4 = sshll.u32 %s265_s0, 4  ;;  %s190_s4 = int_to_ptr.vmem [resolvable:$true] %s189_s4 }
   0x9   :  { %v126_v46 = vsub.s32 5, %v75_v34  ;;  %v116_v50 = vsub.s32 4, %v75_v34  ;;  %v136_v54 = vsub.s32 6, %v75_v34  ;;  %v146_v63 = vsub.s32 7, %v75_v34  ;;  %s233_s6 = scalar_lea.vmem %s190_s4, 128  ;;  %p238_p1 = scmp.lt.s32.totalorder %s190_s4, %s190_s4 }
   0xa   :  { %213 = vset.pattern.permute.xlu1 %v256_v4  ;;  %p234_p0 = scmp.ne.s32.totalorder %s190_s4, %s233_s6  ;;  %p239_p2 = scmp.lt.s32.totalorder %s233_s6, %s233_s6 }
   0xb   :  { %50 = vperm.xlu1 %213, %v23_v3  }
   0xc   :  { %214 = vset.pattern.permute.xlu0 %v255_v2  ;;  %p240_p3 = por %p239_p2, %p238_p1 }
   0xd   :  { %66 = vperm.xlu0 %214, %v58_v5  }
   0xe   :  { %p241_p4 = pnand %p240_p3, %p234_p0 }
   0xf   :  { %215 = vset.pattern.permute.xlu1 %v255_v2 }
  0x10   :  { %80 = vperm.xlu1 %215, %v73_v6  }
  0x11   :  { %217 = vset.pattern.permute.xlu0 %v257_v7 }
  0x12   :  { %99 = vperm.xlu0 %217, %v73_v6  }
  0x14   :  { %216 = vset.pattern.permute.xlu1 %v256_v4 }
  0x15   :  { %89 = vperm.xlu1 %216, %v73_v6  }
  0x16   :  { %220 = vset.pattern.permute.xlu0 %v258_v8 }
  0x17   :  { %129 = vperm.xlu0 %220, %v73_v6  }
  0x19   :  { %218 = vset.pattern.permute.xlu1 %v259_v9 }
  0x1a   :  { %109 = vperm.xlu1 %218, %v73_v6  }
  0x1b   :  { %223 = vset.pattern.permute.xlu0 %v260_v10 }
  0x1c   :  { %159 = vperm.xlu0 %223, %v73_v6  }
  0x1e   :  { %219 = vset.pattern.permute.xlu1 %v261_v11 }
  0x1f   :  { %119 = vperm.xlu1 %219, %v73_v6  }
  0x20   :  { %226 = vset.pattern.permute.xlu0 %v255_v2 }
  0x23   :  { %221 = vset.pattern.permute.xlu1 %v262_v12 }
  0x24   :  { %139 = vperm.xlu1 %221, %v73_v6  }
  0x28   :  { %222 = vset.pattern.permute.xlu1 %v263_v13 }
  0x29   :  { %149 = vperm.xlu1 %222, %v73_v6  }
  0x2d   :  { %224 = vset.pattern.permute.xlu1 %v264_v14 }
  0x2e   :  { %169 = vperm.xlu1 %224, %v73_v6  }
  0x32   :  { %225 = vset.pattern.permute.xlu1 %v255_v2 }
  0x33   :  { %177 = vperm.xlu1 %225, %v174_v15  }
  0x7d   :  { %v62_v16 = vpop.permute.xlu1 %61 }
  0x7e   :  { %v31_v17 = vpop.permute.xlu0 %30 }
  0x7f   :  { %v38_v22 = vmul.f32 %v197_v18, %v31_v17 }
  0x81   :  { %v36_v20 = vpop.permute.xlu1 %35 }
  0x82   :  { %v39_v28 = vmul.f32 %v197_v18, %v36_v20 }
  0x83   :  { %v47_v21 = vpop.permute.xlu0 %46 }
  0x84   :  { %v53_v23 = vmul.f32 %v198_v19, %v47_v21 }
  0x86   :  { %v55_v24 = vadd.f32 %v53_v23, %v38_v22  ;;  %v51_v25 = vpop.permute.xlu1 %50 }
  0x87   :  { %v54_v27 = vmul.f32 %v198_v19, %v51_v25 }
  0x88   :  { %v69_v26 = vadd.f32 %v62_v16, %v55_v24  ;;  %v67_v32 = vpop.permute.xlu0 %66 }
  0x89   :  { %v56_v29 = vadd.f32 %v54_v27, %v39_v28 }
  0x8a   :  { %227 = vtanh.f32 %v69_v26 }
  0x8b   :  { %v81_v31 = vpop.permute.xlu1 %80  ;;  %v70_v33 = vadd.f32 %v67_v32, %v56_v29 }
  0x8d   :  { %229 = vtanh.f32 %v70_v33  ;;  %v100_v45 = vpop.permute.xlu0 %99 }
  0x90   :  { %v90_v35 = vpop.permute.xlu1 %89 }
  0x92   :  { %v130_v59 = vpop.permute.xlu0 %129 }
  0x95   :  { %v110_v40 = vpop.permute.xlu1 %109 }
  0x97   :  { %v228_v41 = vpop.eup %227  ;;  %v160_v8 = vpop.permute.xlu0 %159 }
  0x98   :  { %v77_v42 = vrot.slane %v228_v41, %v76_v36  ;;  %v87_v43 = vrot.slane %v228_v41, %v86_v37  ;;  %v97_v44 = vrot.slane %v228_v41, %v96_v38  ;;  %v107_v49 = vrot.slane %v228_v41, %v106_v39 }
  0x99   :  { %v127_v57 = vrot.slane %v228_v41, %v126_v46  ;;  %v117_v58 = vrot.slane %v228_v41, %v116_v50  ;;  %v137_v3 = vrot.slane %v228_v41, %v136_v54  ;;  %v147_v7 = vrot.slane %v228_v41, %v146_v63 }
  0x9a   :  { %v83_v47 = vmul.f32 %v81_v31, %v77_v42  ;;  %v92_v48 = vmul.f32 %v90_v35, %v87_v43  ;;  %v120_v51 = vpop.permute.xlu1 %119  ;;  %v102_v53 = vmul.f32 %v100_v45, %v97_v44  ;;  %v112_v56 = vmul.f32 %v110_v40, %v107_v49  ;;  %v230_v0 = vpop.eup %229 }
  0x9b   :  { %v122_v61 = vmul.f32 %v120_v51, %v117_v58  ;;  %v132_v1 = vmul.f32 %v130_v59, %v127_v57  ;;  %v157_v4 = vrot.slane %v230_v0, %v76_v36  ;;  %v167_v14 = vrot.slane %v230_v0, %v86_v37 }
  0x9c   :  { %v93_v52 = vadd.f32 %v92_v48, %v83_v47 }
  0x9d   :  { %v162_v12 = vmul.f32 %v160_v8, %v157_v4 }
  0x9e   :  { %v103_v55 = vadd.f32 %v102_v53, %v93_v52 }
  0x9f   :  { %v140_v62 = vpop.permute.xlu1 %139 }
  0xa0   :  { %v113_v60 = vadd.f32 %v112_v56, %v103_v55  ;;  %v142_v6 = vmul.f32 %v140_v62, %v137_v3 }
  0xa2   :  { %v123_v2 = vadd.f32 %v122_v61, %v113_v60 }
  0xa4   :  { %v133_v5 = vadd.f32 %v132_v1, %v123_v2  ;;  %v150_v9 = vpop.permute.xlu1 %149 }
  0xa5   :  { %v152_v11 = vmul.f32 %v150_v9, %v147_v7 }
  0xa6   :  { %v143_v10 = vadd.f32 %v142_v6, %v133_v5 }
  0xa8   :  { %v153_v13 = vadd.f32 %v152_v11, %v143_v10 }
  0xa9   :  { %v170_v15 = vpop.permute.xlu1 %169 }
  0xaa   :  { %v163_v16 = vadd.f32 %v162_v12, %v153_v13  ;;  %v172_v17 = vmul.f32 %v170_v15, %v167_v14 }
  0xac   :  { %v173_v18 = vadd.f32 %v172_v17, %v163_v16 }
  0xae   :  { %v178_v19 = vpop.permute.xlu1 %177 }
  0xaf   :  { %v180_v20 = vadd.f32 %v178_v19, %v173_v18 }
  0xb1   :  { %231 = vtanh.f32 %v180_v20 }
  0xbe   :  { %v232_v21 = vpop.eup %231 }
  0xbf   :  { %182 = vst [vmem:[#allocation2] sm:$0xff] %v232_v21 }
  0xc0   :  { %244 = shalt.err (!%p241_p4)
}
  0xc1   :  { %192 = dma.vmem_to_hbm [thread:$0]  %s190_s4, 128, %s328_s5, [#allocation3]  }
  0xc2   :  { %253 = dma.done.wait [#allocation3], 128  }
  0xc3   :  { %254 = vsyncadd [#allocation3], 4294967168 }
  0xc4   :  { %196 = vsyncpa [#allocation3], 1 }

</bundles_post_ra>
